<compile_context>
chip_gen: v6e
topology: v6e:2x2x1
jax: 0.10.0
libtpu: 0.0.40
codegen_flags: <defaults>
</compile_context>

<pallas_src>
import functools

import jax
import jax.numpy as jnp
from jax import lax
from jax.experimental import pallas as pl
from jax.experimental.pallas import tpu as pltpu


def _hidden_attention_kernel(x_ref, wv_ref, wkq_ref, bv_ref, bkq_ref, o_ref, *,
                             block_b, hidden_len, value_size, compute_dtype,
                             approx_recip):
    """One grid step processes `block_b` batch elements.

    x_ref:   (L, block_b*D)            float32 input slab (b-major lane groups)
    wv_ref:  (block_b*D, block_b*Vs)   block-diag kron(I, W_v.T)      (compute dtype)
    wkq_ref: (block_b*D, block_b*H)    block-diag kron(I, W_kq.T)/T   (compute dtype)
    bv_ref:  (1, block_b*Vs)           tiled V bias                   (float32)
    bkq_ref: (1, block_b*H)            tiled fused KQ bias (already /T, float32)
    o_ref:   (H, block_b*Vs)           output slab                    (float32)
    """
    x = x_ref[...].astype(compute_dtype)

    # Projections for all block_b batch elements at once (block-diagonal weights
    # keep each batch's D-contraction confined to its own lane group).
    v = lax.dot_general(x, wv_ref[...], (((1,), (0,)), ((), ())),
                        preferred_element_type=jnp.float32) + bv_ref[...]
    kq = lax.dot_general(x, wkq_ref[...], (((1,), (0,)), ((), ())),
                         preferred_element_type=jnp.float32) + bkq_ref[...]

    # Softmax over the length axis (axis 0), vectorized over every (b, h) column.
    m = jnp.max(kq, axis=0, keepdims=True)
    e = jnp.exp(kq - m)
    denom = jnp.sum(e, axis=0, keepdims=True)
    sfm = e * pl.reciprocal(denom, approx=approx_recip)      # (L, block_b*H)

    vc = v.astype(compute_dtype)
    sc = sfm.astype(compute_dtype)

    # Small per-b second contraction: (L,H)^T @ (L,Vs) -> (H,Vs).  block_b tiny
    # MXU dots; results packed into one lane-dense slab and stored once.
    pieces = []
    for b in range(block_b):
        s_b = sc[:, b * hidden_len:(b + 1) * hidden_len]     # (L, H) static lane slice
        v_b = vc[:, b * value_size:(b + 1) * value_size]     # (L, Vs)
        h_b = lax.dot_general(s_b, v_b, (((0,), (0,)), ((), ())),
                              preferred_element_type=jnp.float32)
        pieces.append(h_b)
    o_ref[...] = jnp.concatenate(pieces, axis=1).astype(o_ref.dtype)


def _pick_block_b(batch, seq_len, input_size, value_size, hidden_len,
                  w_itemsize, max_block_b=8, vmem_budget=40 * 2**20):
    """Largest block_b <= max_block_b that divides B, keeps lane dims 128-aligned
    (unless it covers the whole batch), fits the VMEM budget, and (when possible)
    leaves >= 2 grid steps for v7x's two TensorCores."""
    def est_bytes(bt):
        x_tile = seq_len * bt * input_size * 4
        w_tile = bt * input_size * bt * (value_size + hidden_len) * w_itemsize
        o_tile = hidden_len * bt * value_size * 4
        inter = seq_len * bt * (2 * input_size + 3 * (value_size + hidden_len)) * 4
        return 2 * (x_tile + w_tile + o_tile) + inter        # double-buffered tiles

    def valid(bt):
        if batch % bt:
            return False
        if batch // bt > 1:
            if (bt * input_size) % 128 or (bt * value_size) % 128:
                return False
        return est_bytes(bt) <= vmem_budget

    cands = [bt for bt in range(1, min(batch, max_block_b) + 1) if valid(bt)]
    multi = [bt for bt in cands if batch // bt >= 2]
    pool = multi if multi else cands
    return max(pool) if pool else batch


def hidden_attention_forward(x_lbd, w_v, b_v, w_k, b_k, h_q, temperature=1.0,
                             *, block_b=None, use_fast_math=True):
    """x_lbd: (L, B, D) float32.  Returns (H, B, Vs), matching the PyTorch module."""
    L, B, D = x_lbd.shape
    Vs = w_v.shape[0]
    H, Ks = h_q.shape
    assert w_k.shape == (Ks, D) and b_k.shape == (Ks,) and b_v.shape == (Vs,)

    compute_dtype = jnp.bfloat16 if use_fast_math else jnp.float32
    w_itemsize = jnp.dtype(compute_dtype).itemsize

    # --- exact algebraic fusion of the K projection, H_Q matmul and temperature ---
    inv_t = 1.0 / float(temperature)
    w_kq = (h_q @ w_k) * inv_t                               # (H, D)
    b_kq = (h_q @ b_k) * inv_t                               # (H,)

    if block_b is None:
        block_b = _pick_block_b(B, L, D, Vs, H, w_itemsize)
    assert B % block_b == 0, "block_b must divide the batch size"
    grid_b = B // block_b
    if grid_b > 1:
        assert (block_b * D) % 128 == 0 and (block_b * Vs) % 128 == 0, \
            "block_b must keep lane dims 128-aligned unless it covers the whole batch"

    # Block-diagonal weights: one 2-D dot projects all block_b batch elements.
    eye = jnp.eye(block_b, dtype=jnp.float32)
    wv_blk = jnp.kron(eye, w_v.T).astype(compute_dtype)       # (bb*D, bb*Vs)
    wkq_blk = jnp.kron(eye, w_kq.T).astype(compute_dtype)     # (bb*D, bb*H)
    bv_blk = jnp.tile(b_v, block_b).reshape(1, block_b * Vs).astype(jnp.float32)
    bkq_blk = jnp.tile(b_kq, block_b).reshape(1, block_b * H).astype(jnp.float32)

    # Free metadata reshape -- NO transpose / cast pass over x.
    x2 = x_lbd.reshape(L, B * D)

    # VMEM limit derived from the actual tile bytes (double-buffered) + headroom.
    x_tile = L * block_b * D * 4
    w_tile = block_b * D * block_b * (Vs + H) * w_itemsize
    o_tile = H * block_b * Vs * 4
    inter = L * block_b * (2 * D + 3 * (Vs + H)) * 4
    est = 2 * (x_tile + w_tile + o_tile) + inter
    vmem_limit = int(min(max(32 * 2**20, 2 * est), 48 * 2**20))

    kernel = functools.partial(
        _hidden_attention_kernel,
        block_b=block_b, hidden_len=H, value_size=Vs,
        compute_dtype=compute_dtype, approx_recip=bool(use_fast_math))

    out_hbv = pl.pallas_call(
        kernel,
        out_shape=jax.ShapeDtypeStruct((H, B * Vs), jnp.float32),
        grid_spec=pltpu.PrefetchScalarGridSpec(
            num_scalar_prefetch=0,
            grid=(grid_b,),
            in_specs=[
                pl.BlockSpec((L, block_b * D), lambda i: (0, i)),            # x slab
                pl.BlockSpec((block_b * D, block_b * Vs), lambda i: (0, 0)),  # W_v blk
                pl.BlockSpec((block_b * D, block_b * H), lambda i: (0, 0)),   # W_kq blk
                pl.BlockSpec((1, block_b * Vs), lambda i: (0, 0)),            # b_v
                pl.BlockSpec((1, block_b * H), lambda i: (0, 0)),             # b_kq
            ],
            out_specs=pl.BlockSpec((H, block_b * Vs), lambda i: (0, i)),
        ),
        compiler_params=pltpu.CompilerParams(
            dimension_semantics=("parallel",),
            vmem_limit_bytes=vmem_limit,
        ),
    )(x2, wv_blk, wkq_blk, bv_blk, bkq_blk)

    return out_hbv.reshape(H, B, Vs)                          # free reshape, no transpose


def _reference_forward(x_lbd, w_v, b_v, w_k, b_k, h_q, temperature=1.0):
    """Pure-JAX reference mirroring the PyTorch code exactly."""
    v = jnp.einsum('lbd,vd->lbv', x_lbd, w_v) + b_v           # (L, B, Vs)
    k = jnp.einsum('lbd,kd->lbk', x_lbd, w_k) + b_k           # (L, B, Ks)
    kq = jnp.einsum('lbk,hk->lbh', k, h_q) / temperature      # (L, B, H)
    sfm = jax.nn.softmax(kq, axis=0)                          # softmax over length
    hidden = jnp.einsum('lbh,lbv->bhv', sfm, v)               # (B, H, Vs)
    return jnp.transpose(hidden, (1, 0, 2))                   # (H, B, Vs)


if __name__ == "__main__":
    # Small shapes consistent with the module's forward signature.
    L, B = 8, 16                # length, batch (B=16 -> block_b=8, grid of 2 steps)
    input_size = 32             # D
    hidden_len = 4              # H
    value_size = 16             # Vs
    key_size = 16               # Ks
    temperature = 1.7           # non-trivial, exercises the folded scaling

    key = jax.random.PRNGKey(0)
    kx, kwv, kbv, kwk, kbk, khq = jax.random.split(key, 6)

    x = jax.random.normal(kx, (L, B, input_size), dtype=jnp.float32)

    # Deterministic parameter init (shapes follow the PyTorch __init__).
    bound = 1.0 / jnp.sqrt(input_size)
    w_v = jax.random.uniform(kwv, (value_size, input_size), jnp.float32, -bound, bound)
    b_v = jax.random.uniform(kbv, (value_size,), jnp.float32, -bound, bound)
    w_k = jax.random.uniform(kwk, (key_size, input_size), jnp.float32, -bound, bound)
    b_k = jax.random.uniform(kbk, (key_size,), jnp.float32, -bound, bound)
    std_hq = jnp.sqrt(2.0 / (input_size + key_size))
    h_q = std_hq * jax.random.normal(khq, (hidden_len, key_size), jnp.float32)

    ref = _reference_forward(x, w_v, b_v, w_k, b_k, h_q, temperature)

    # Fast path (default): bf16 MXU inputs + approximate reciprocal.
    out_fast = hidden_attention_forward(x, w_v, b_v, w_k, b_k, h_q, temperature)
    out_fast = jax.block_until_ready(out_fast)

    # f32 path: validates that the algebraic fusion / blocking / layout is exact.
    out_exact = hidden_attention_forward(x, w_v, b_v, w_k, b_k, h_q, temperature,
                                         use_fast_math=False)
    out_exact = jax.block_until_ready(out_exact)

    assert out_fast.shape == (hidden_len, B, value_size)
    assert out_exact.shape == (hidden_len, B, value_size)
    assert jnp.allclose(out_exact, ref, atol=5e-4, rtol=5e-4), "f32 path mismatch"
    assert jnp.allclose(out_fast, ref, atol=3e-2, rtol=3e-2), "bf16 fast path mismatch"

    # TODO(synk): the module also caches self.sfm_KQ as a side attribute; only the
    # returned hidden tensor is produced here.
    print("KERNEL_OK")
</pallas_src>

<mosaic_0001>
module attributes {stable_mosaic.version = 11 : i64} {
  func.func @_hidden_attention_kernel(%arg0: i32, %arg1: memref<8x256xf32, #tpu.memory_space<vmem>>, %arg2: memref<256x128xbf16, #tpu.memory_space<vmem>>, %arg3: memref<256x32xbf16, #tpu.memory_space<vmem>>, %arg4: memref<1x128xf32, #tpu.memory_space<vmem>>, %arg5: memref<1x32xf32, #tpu.memory_space<vmem>>, %arg6: memref<4x128xf32, #tpu.memory_space<vmem>>) attributes {dimension_semantics = [#tpu.dimension_semantics<parallel>], iteration_bounds = array<i64: 2>, scalar_prefetch = 0 : i64, scratch_operands = 0 : i64, tpu.core_type = #tpu.core_type<tc>, window_params = [{transform_indices = @transform_0, window_bounds = array<i64: 8, 256>}, {pipeline_mode = #tpu.pipeline_mode<synchronous>, transform_indices = @transform_1, window_bounds = array<i64: 256, 128>}, {pipeline_mode = #tpu.pipeline_mode<synchronous>, transform_indices = @transform_2, window_bounds = array<i64: 256, 32>}, {pipeline_mode = #tpu.pipeline_mode<synchronous>, transform_indices = @transform_3, window_bounds = array<i64: 1, 128>}, {pipeline_mode = #tpu.pipeline_mode<synchronous>, transform_indices = @transform_4, window_bounds = array<i64: 1, 32>}, {transform_indices = @transform_5, window_bounds = array<i64: 4, 128>}]} {
    %c0 = arith.constant 0 : index
    %c0_0 = arith.constant 0 : index
    %0 = vector.load %arg1[%c0, %c0_0] : memref<8x256xf32, #tpu.memory_space<vmem>>, vector<8x256xf32>
    %1 = arith.truncf %0 : vector<8x256xf32> to vector<8x256xbf16>
    %c0_1 = arith.constant 0 : index
    %c0_2 = arith.constant 0 : index
    %2 = vector.load %arg2[%c0_1, %c0_2] : memref<256x128xbf16, #tpu.memory_space<vmem>>, vector<256x128xbf16>
    %cst = arith.constant dense<0.000000e+00> : vector<8x128xf32>
    %3 = tpu.matmul %1, %2, %cst {dimension_numbers = #tpu.dot_dimension_numbers<[1], [0], [0], [1], [0, 0, 1, 1], [], []>} : vector<8x256xbf16>, vector<256x128xbf16>, vector<8x128xf32> -> vector<8x128xf32>
    %c0_3 = arith.constant 0 : index
    %c0_4 = arith.constant 0 : index
    %4 = vector.load %arg4[%c0_3, %c0_4] : memref<1x128xf32, #tpu.memory_space<vmem>>, vector<1x128xf32>
    %5 = vector.broadcast %4 : vector<1x128xf32> to vector<8x128xf32>
    %6 = arith.addf %3, %5 : vector<8x128xf32>
    %c0_5 = arith.constant 0 : index
    %c0_6 = arith.constant 0 : index
    %7 = vector.load %arg3[%c0_5, %c0_6] : memref<256x32xbf16, #tpu.memory_space<vmem>>, vector<256x32xbf16>
    %cst_7 = arith.constant dense<0.000000e+00> : vector<8x32xf32>
    %8 = tpu.matmul %1, %7, %cst_7 {dimension_numbers = #tpu.dot_dimension_numbers<[1], [0], [0], [1], [0, 0, 1, 1], [], []>} : vector<8x256xbf16>, vector<256x32xbf16>, vector<8x32xf32> -> vector<8x32xf32>
    %c0_8 = arith.constant 0 : index
    %c0_9 = arith.constant 0 : index
    %9 = vector.load %arg5[%c0_8, %c0_9] : memref<1x32xf32, #tpu.memory_space<vmem>>, vector<1x32xf32>
    %10 = vector.broadcast %9 : vector<1x32xf32> to vector<8x32xf32>
    %11 = arith.addf %8, %10 : vector<8x32xf32>
    %cst_10 = arith.constant dense<0xFF800000> : vector<32xf32>
    %12 = vector.multi_reduction <maximumf>, %11, %cst_10 [0] : vector<8x32xf32> to vector<32xf32>
    %13 = vector.shape_cast %12 : vector<32xf32> to vector<1x32xf32>
    %14 = vector.broadcast %13 : vector<1x32xf32> to vector<8x32xf32>
    %15 = arith.subf %11, %14 : vector<8x32xf32>
    %16 = math.exp %15 : vector<8x32xf32>
    %cst_11 = arith.constant dense<0.000000e+00> : vector<32xf32>
    %17 = vector.multi_reduction <add>, %16, %cst_11 [0] : vector<8x32xf32> to vector<32xf32>
    %18 = vector.shape_cast %17 : vector<32xf32> to vector<1x32xf32>
    %19 = tpu.reciprocal %18 {approx = true} : vector<1x32xf32> -> vector<1x32xf32>
    %20 = vector.broadcast %19 : vector<1x32xf32> to vector<8x32xf32>
    %21 = arith.mulf %16, %20 : vector<8x32xf32>
    %22 = arith.truncf %6 : vector<8x128xf32> to vector<8x128xbf16>
    %23 = arith.truncf %21 : vector<8x32xf32> to vector<8x32xbf16>
    %24 = vector.extract_strided_slice %23 {offsets = [0, 0], sizes = [8, 4], strides = [1, 1]} : vector<8x32xbf16> to vector<8x4xbf16>
    %25 = vector.extract_strided_slice %22 {offsets = [0, 0], sizes = [8, 16], strides = [1, 1]} : vector<8x128xbf16> to vector<8x16xbf16>
    %cst_12 = arith.constant dense<0.000000e+00> : vector<4x16xf32>
    %26 = tpu.matmul %24, %25, %cst_12 {dimension_numbers = #tpu.dot_dimension_numbers<[0], [0], [1], [1], [0, 1, 1, 1], [], []>} : vector<8x4xbf16>, vector<8x16xbf16>, vector<4x16xf32> -> vector<4x16xf32>
    %27 = vector.extract_strided_slice %23 {offsets = [0, 4], sizes = [8, 4], strides = [1, 1]} : vector<8x32xbf16> to vector<8x4xbf16>
    %28 = vector.extract_strided_slice %22 {offsets = [0, 16], sizes = [8, 16], strides = [1, 1]} : vector<8x128xbf16> to vector<8x16xbf16>
    %cst_13 = arith.constant dense<0.000000e+00> : vector<4x16xf32>
    %29 = tpu.matmul %27, %28, %cst_13 {dimension_numbers = #tpu.dot_dimension_numbers<[0], [0], [1], [1], [0, 1, 1, 1], [], []>} : vector<8x4xbf16>, vector<8x16xbf16>, vector<4x16xf32> -> vector<4x16xf32>
    %30 = vector.extract_strided_slice %23 {offsets = [0, 8], sizes = [8, 4], strides = [1, 1]} : vector<8x32xbf16> to vector<8x4xbf16>
    %31 = vector.extract_strided_slice %22 {offsets = [0, 32], sizes = [8, 16], strides = [1, 1]} : vector<8x128xbf16> to vector<8x16xbf16>
    %cst_14 = arith.constant dense<0.000000e+00> : vector<4x16xf32>
    %32 = tpu.matmul %30, %31, %cst_14 {dimension_numbers = #tpu.dot_dimension_numbers<[0], [0], [1], [1], [0, 1, 1, 1], [], []>} : vector<8x4xbf16>, vector<8x16xbf16>, vector<4x16xf32> -> vector<4x16xf32>
    %33 = vector.extract_strided_slice %23 {offsets = [0, 12], sizes = [8, 4], strides = [1, 1]} : vector<8x32xbf16> to vector<8x4xbf16>
    %34 = vector.extract_strided_slice %22 {offsets = [0, 48], sizes = [8, 16], strides = [1, 1]} : vector<8x128xbf16> to vector<8x16xbf16>
    %cst_15 = arith.constant dense<0.000000e+00> : vector<4x16xf32>
    %35 = tpu.matmul %33, %34, %cst_15 {dimension_numbers = #tpu.dot_dimension_numbers<[0], [0], [1], [1], [0, 1, 1, 1], [], []>} : vector<8x4xbf16>, vector<8x16xbf16>, vector<4x16xf32> -> vector<4x16xf32>
    %36 = vector.extract_strided_slice %23 {offsets = [0, 16], sizes = [8, 4], strides = [1, 1]} : vector<8x32xbf16> to vector<8x4xbf16>
    %37 = vector.extract_strided_slice %22 {offsets = [0, 64], sizes = [8, 16], strides = [1, 1]} : vector<8x128xbf16> to vector<8x16xbf16>
    %cst_16 = arith.constant dense<0.000000e+00> : vector<4x16xf32>
    %38 = tpu.matmul %36, %37, %cst_16 {dimension_numbers = #tpu.dot_dimension_numbers<[0], [0], [1], [1], [0, 1, 1, 1], [], []>} : vector<8x4xbf16>, vector<8x16xbf16>, vector<4x16xf32> -> vector<4x16xf32>
    %39 = vector.extract_strided_slice %23 {offsets = [0, 20], sizes = [8, 4], strides = [1, 1]} : vector<8x32xbf16> to vector<8x4xbf16>
    %40 = vector.extract_strided_slice %22 {offsets = [0, 80], sizes = [8, 16], strides = [1, 1]} : vector<8x128xbf16> to vector<8x16xbf16>
    %cst_17 = arith.constant dense<0.000000e+00> : vector<4x16xf32>
    %41 = tpu.matmul %39, %40, %cst_17 {dimension_numbers = #tpu.dot_dimension_numbers<[0], [0], [1], [1], [0, 1, 1, 1], [], []>} : vector<8x4xbf16>, vector<8x16xbf16>, vector<4x16xf32> -> vector<4x16xf32>
    %42 = vector.extract_strided_slice %23 {offsets = [0, 24], sizes = [8, 4], strides = [1, 1]} : vector<8x32xbf16> to vector<8x4xbf16>
    %43 = vector.extract_strided_slice %22 {offsets = [0, 96], sizes = [8, 16], strides = [1, 1]} : vector<8x128xbf16> to vector<8x16xbf16>
    %cst_18 = arith.constant dense<0.000000e+00> : vector<4x16xf32>
    %44 = tpu.matmul %42, %43, %cst_18 {dimension_numbers = #tpu.dot_dimension_numbers<[0], [0], [1], [1], [0, 1, 1, 1], [], []>} : vector<8x4xbf16>, vector<8x16xbf16>, vector<4x16xf32> -> vector<4x16xf32>
    %45 = vector.extract_strided_slice %23 {offsets = [0, 28], sizes = [8, 4], strides = [1, 1]} : vector<8x32xbf16> to vector<8x4xbf16>
    %46 = vector.extract_strided_slice %22 {offsets = [0, 112], sizes = [8, 16], strides = [1, 1]} : vector<8x128xbf16> to vector<8x16xbf16>
    %cst_19 = arith.constant dense<0.000000e+00> : vector<4x16xf32>
    %47 = tpu.matmul %45, %46, %cst_19 {dimension_numbers = #tpu.dot_dimension_numbers<[0], [0], [1], [1], [0, 1, 1, 1], [], []>} : vector<8x4xbf16>, vector<8x16xbf16>, vector<4x16xf32> -> vector<4x16xf32>
    %48 = tpu.concatenate %26, %29, %32, %35, %38, %41, %44, %47 in 1 : vector<4x16xf32>, vector<4x16xf32>, vector<4x16xf32>, vector<4x16xf32>, vector<4x16xf32>, vector<4x16xf32>, vector<4x16xf32>, vector<4x16xf32> -> vector<4x128xf32>
    %c0_20 = arith.constant 0 : index
    %c0_21 = arith.constant 0 : index
    %49 = vector.load %arg6[%c0_20, %c0_21] : memref<4x128xf32, #tpu.memory_space<vmem>>, vector<4x128xf32>
    tpu.vector_store %arg6[%c0_20, %c0_21], %48 {strides = array<i32>} : memref<4x128xf32, #tpu.memory_space<vmem>>, vector<4x128xf32>,
    return
  }
  func.func @transform_0(%arg0: i32) -> (i32, i32) {
    %c0_i32 = arith.constant 0 : i32
    %c0_i32_0 = arith.constant 0 : i32
    return %c0_i32, %arg0 : i32, i32
  }
  func.func @transform_1(%arg0: i32) -> (i32, i32) {
    %c0_i32 = arith.constant 0 : i32
    %c0_i32_0 = arith.constant 0 : i32
    %c0_i32_1 = arith.constant 0 : i32
    return %c0_i32, %c0_i32_0 : i32, i32
  }
  func.func @transform_2(%arg0: i32) -> (i32, i32) {
    %c0_i32 = arith.constant 0 : i32
    %c0_i32_0 = arith.constant 0 : i32
    %c0_i32_1 = arith.constant 0 : i32
    return %c0_i32, %c0_i32_0 : i32, i32
  }
  func.func @transform_3(%arg0: i32) -> (i32, i32) {
    %c0_i32 = arith.constant 0 : i32
    %c0_i32_0 = arith.constant 0 : i32
    %c0_i32_1 = arith.constant 0 : i32
    return %c0_i32, %c0_i32_0 : i32, i32
  }
  func.func @transform_4(%arg0: i32) -> (i32, i32) {
    %c0_i32 = arith.constant 0 : i32
    %c0_i32_0 = arith.constant 0 : i32
    %c0_i32_1 = arith.constant 0 : i32
    return %c0_i32, %c0_i32_0 : i32, i32
  }
  func.func @transform_5(%arg0: i32) -> (i32, i32) {
    %c0_i32 = arith.constant 0 : i32
    %c0_i32_0 = arith.constant 0 : i32
    return %c0_i32, %arg0 : i32, i32
  }
}

</mosaic_0001>

<bundles_post_ra>
// kernel: tpu_custom_call.1
= control target key start
LH: loop header
LB: loop body
LE: loop exit
PB: predicated region body
PF: predicated region fallthrough
CT: control target
= control target key end

     0   :  { %10 = vsyncpa [#allocation3], 0  ;;  %s1868_s0 = inlined_call_operand.vmem [shape: f32[8,512], index: 0, kind: input, shape index: {}]   ;;  %s1869_s1 = inlined_call_operand.vmem [shape: bf16[256,128], index: 1, kind: input, shape index: {}]   ;;  %s1870_s2 = inlined_call_operand.vmem [shape: bf16[256,32], index: 2, kind: input, shape index: {}]   ;;  %s1871_s3 = inlined_call_operand.vmem [shape: f32[1,128], index: 3, kind: input, shape index: {}]   ;;  %s1872_s4 = inlined_call_operand.vmem [shape: f32[1,32], index: 4, kind: input, shape index: {}]   ;;  %s1873_s5 = inlined_call_operand.hbm [shape: f32[4,256], index: 5, kind: output, shape index: {}]  }
   0x1   :  { %12 = vsyncpa [#allocation3 + $0x1], 0  ;;  %s1612_s18 = smov 0   ;;  %s1614_s19 = smov 0  }
   0x2   :  { %s1616_s20 = smov 0   ;;  %s1618_s21 = smov 0  }
   0x3 LB: > { %s1633_s22 = sadd.s32 4294967295, %s1564_s21   ;;  %s1252_s23 = sadd.s32 4294967294, %s1564_s21   ;;  %s1564_s21 = sphi %s1618_s21, %s1879_s21   ;;  %s1560_s20 = sphi %s1616_s20, %s1878_s20   ;;  %s1556_s19 = sphi %s1614_s19, %s1877_s19   ;;  %s1552_s18 = sphi %s1612_s18, %s1876_s18  }
   0x4   : > { %s1637_s24 = sadd.s32 1, %s1564_s21   ;;  %s135_s25 = sadd.s32 1, %s1560_s20 }
   0x5   : > { %s132_s26 = ssub.s32 %s1564_s21, %s1637_s24  ;;  %p145_p0 = scmp.ne.s32.totalorder %s1560_s20, %s1556_s19 }
   0x6   : > { %p133_p1 = scmp.eq.s32.totalorder %s132_s26, 0  ;;  %p146_p2 = scmp.eq.s32.totalorder %s1633_s22, 1 }
   0x7   : > { %p151_p3 = scmp.ne.s32.totalorder %s1556_s19, %s1552_s18  ;;  %p152_p4 = scmp.eq.s32.totalorder %s1252_s23, 1 }
   0x8   : > { %s1648_s27 = scalar_select %p133_p1, %s1560_s20, %s135_s25  }
   0x9   : > { %p1650_p5 = por %p146_p2, %p145_p0  ;;  %p1654_p6 = por %p152_p4, %p151_p3 }
   0xa   : > { %p1255_p7 = scmp.ge.s32.totalorder %s1564_s21, 1  ;;  %p191_p8 = scmp.lt.s32.totalorder %s1564_s21, 3 }
   0xc   : > { %p192_p9 = pnand %p1255_p7, %p191_p8 }
   0xd   : > { %s1257_s7 = sshll.u32 (!%p192_p9), %s1633_s22, 1  ;;  %s1568_s16 = smov (!%p192_p9), 80  }
   0xe   : > { %195 = sbr.rel (%p192_p9) target bundleno = 873 (0x369), region = 40  ;;  %p220_p10 = scmp.lt.s32.totalorder (!%p192_p9), %s1257_s7, 3 }
   0xf   : > { %s1569_s17 = smov (!%p192_p9), 124   ;;  %s1570_s23 = smov (!%p192_p9), 116  }
  0x10   : > { %s1571_s25 = smov (!%p192_p9), 120   ;;  %s1573_s30 = smov (!%p192_p9), 48  }
  0x11   : > { %s1574_s6 = smov (!%p192_p9), 108   ;;  %s1575_s8 = smov (!%p192_p9), 104  }
  0x12   : > { %s1577_s9 = smov (!%p192_p9), 64   ;;  %s1578_s10 = smov (!%p192_p9), 16  }
  0x13   : > { %v1468_v0 = vld [vmem:[%s1870_s2 + $0x78] sm:$0xff]   ;;  %v1470_v2 = vld [vmem:[%s1870_s2 + $0x70] sm:$0xff]   ;;  %v1472_v4 = vld [vmem:[%s1870_s2 + $0x68] sm:$0xff]   ;;  %s1881_s7 = smov (!%p220_p10, %s1257_s7), 3  ;;  %v1566_v36 = vmov 0.0   ;;  %vm580_vm0 = vcmask 261120  }
  0x14   : > { %v1469_v1 = vld [vmem:[%s1870_s2 + $0x38] sm:$0xff]   ;;  %1327 = vmatprep.subr.bf16.mxu1 %v1468_v0  ;;  %v1471_v3 = vld [vmem:[%s1870_s2 + $0x30] sm:$0xff]   ;;  %v1473_v5 = vld [vmem:[%s1870_s2 + $0x28] sm:$0xff]   ;;  %s1258_s26 = sshll.u32 %s1881_s7, 3  ;;  %vm622_vm1 = vcmask 1043456   ;;  %vm1576_vm2 = vmmov 0  }
  0x15   : > { %1328 = vmatpush3.bf16.msra.mxu1 %v1469_v1  ;;  %v1474_v6 = vld [vmem:[%s1870_s2 + $0x60] sm:$0xff]   ;;  %v1476_v8 = vld [vmem:[%s1870_s2 + $0x58] sm:$0xff]   ;;  %s1691_s12 = scalar_lea.vmem %s1868_s0, %s1258_s26  ;;  %v1478_v10 = vld [vmem:[%s1870_s2 + $0x50] sm:$0xff]   ;;  %s1572_s26 = smov 96   ;;  %vm618_vm3 = vcmask 64512   ;;  %vm1165_vm4 = vcmask 130048  }
  0x16   : > { %1329 = vmatprep.subr.bf16.mxu1 %v1470_v2  ;;  %v1475_v7 = vld [vmem:[%s1870_s2 + $0x20] sm:$0xff]   ;;  %v1477_v9 = vld [vmem:[%s1870_s2 + $0x18] sm:$0xff]   ;;  %v227_v11 = vld [vmem:[%s1691_s12 + $0x8] sm:$0xff]  ;;  %s1579_s11 = smov 100   ;;  %s1580_s13 = smov 32   ;;  %vm1168_vm5 = vcmask 392192  }
  0x17   : > { %v1479_v12 = vld [vmem:[%s1870_s2 + $0x10] sm:$0xff]   ;;  %v229_v13 = vpack.c.bf16 %v227_v11, %v227_v11  ;;  %v1484_v14 = vld [vmem:[%s1869_s1 + $0x78] sm:$0xff]   ;;  %v1480_v17 = vld [vmem:[%s1870_s2 + $0x48] sm:$0xff]   ;;  %s216_s14 = sand.u32 1, %s1556_s19   ;;  %vm1170_vm6 = vcmask 523264   ;;  %vm1172_vm7 = vcmask 654336  }
  0x18   : > { %v1485_v15 = vld [vmem:[%s1869_s1 + $0x38] sm:$0xff]   ;;  %v1486_v16 = vld [vmem:[%s1869_s1 + $0x70] sm:$0xff]   ;;  %1305 = vmatprep.subr.bf16.mxu0 %v1484_v14  ;;  %v1488_v19 = vld [vmem:[%s1869_s1 + $0x68] sm:$0xff]   ;;  %s1256_s7 = sshll.u32 %s216_s14, 2  ;;  %vm1174_vm8 = vcmask 785408   ;;  %s1302_s15 = sshll.u32 %s1633_s22, 6 }
  0x19   : > { %1330 = vmatpush3.bf16.msra.mxu1 %v1471_v3  ;;  %572 = vmatprep.mubr.bf16.mxu1 %v229_v13  ;;  %v1487_v18 = vld [vmem:[%s1869_s1 + $0x30] sm:$0xff]   ;;  %v1481_v20 = vld [vmem:[%s1870_s2 + $0x8] sm:$0xff]   ;;  %v1482_v21 = vld [vmem:[%s1870_s2 + $0x40] sm:$0xff]   ;;  %vm1176_vm9 = vcmask 916480   ;;  %s1581_s22 = smov [#allocation2]  }
  0x1a   : > { %1331 = vmatprep.subr.bf16.mxu1 %v1472_v4  ;;  %1306 = vmatpush3.bf16.msra.mxu0 %v1485_v15  ;;  %v1483_v22 = vld [vmem:[%s1870_s2] sm:$0xff]   ;;  %v1489_v23 = vld [vmem:[%s1869_s1 + $0x28] sm:$0xff]   ;;  %v1492_v28 = vld [vmem:[%s1869_s1 + $0x58] sm:$0xff]  }
  0x1b   : > { %397 = vmatprep.mubr.bf16.mxu0 %v229_v13  ;;  %1307 = vmatprep.subr.bf16.mxu0 %v1486_v16  ;;  %v1490_v24 = vld [vmem:[%s1869_s1 + $0x60] sm:$0xff]   ;;  %v1493_v29 = vld [vmem:[%s1869_s1 + $0x18] sm:$0xff]   ;;  %v1494_v30 = vld [vmem:[%s1869_s1 + $0x50] sm:$0xff]  }
  0x1c   : > { %v226_v25 = vld [vmem:[%s1691_s12] sm:$0xff]  ;;  %v1495_v31 = vld [vmem:[%s1869_s1 + $0x10] sm:$0xff]   ;;  %v1496_v32 = vld [vmem:[%s1869_s1 + $0x48] sm:$0xff]   ;;  %s1567_s12 = smov 112  }
  0x1d   : > { %1332 = vmatpush3.bf16.msra.mxu1 %v1473_v5  ;;  %v1491_v26 = vld [vmem:[%s1869_s1 + $0x20] sm:$0xff]   ;;  %v228_v27 = vpack.c.bf16 %v226_v25, %v226_v25  ;;  %v1497_v33 = vld [vmem:[%s1869_s1 + $0x8] sm:$0xff]  }
  0x1e   : > { %1333 = vmatprep.subr.bf16.mxu1 %v1474_v6  ;;  %1308 = vmatpush3.bf16.msra.mxu0 %v1487_v18  ;;  %v1498_v34 = vld [vmem:[%s1869_s1 + $0x40] sm:$0xff]  }
  0x1f   : > { %1309 = vmatprep.subr.bf16.mxu0 %v1488_v19  ;;  %v1499_v35 = vld [vmem:[%s1869_s1] sm:$0xff]  }
  0x20   : > { %v1276_v38 = vld [vmem:[%s1872_s4] ss:$0 sm:$0xff] }
  0x21   : > { %1334 = vmatpush3.bf16.msra.mxu1 %v1475_v7  ;;  %v1259_v53 = vld [vmem:[%s1871_s3] ss:$0 sm:$0xff] }
  0x22   : > { %1335 = vmatprep.subr.bf16.mxu1 %v1476_v8  ;;  %1310 = vmatpush3.bf16.msra.mxu0 %v1489_v23 }
  0x23   : > { %1311 = vmatprep.subr.bf16.mxu0 %v1490_v24 }
  0x25   : > { %1336 = vmatpush3.bf16.msra.mxu1 %v1477_v9 }
  0x26   : > { %1337 = vmatprep.subr.bf16.mxu1 %v1478_v10  ;;  %1312 = vmatpush3.bf16.msra.mxu0 %v1491_v26 }
  0x27   : > { %1313 = vmatprep.subr.bf16.mxu0 %v1492_v28 }
  0x29   : > { %1338 = vmatpush3.bf16.msra.mxu1 %v1479_v12 }
  0x2a   : > { %1339 = vmatprep.subr.bf16.mxu1 %v1480_v17  ;;  %1314 = vmatpush3.bf16.msra.mxu0 %v1493_v29 }
  0x2b   : > { %1315 = vmatprep.subr.bf16.mxu0 %v1494_v30 }
  0x2d   : > { %1340 = vmatpush3.bf16.msra.mxu1 %v1481_v20 }
  0x2e   : > { %1341 = vmatprep.subr.bf16.mxu1 %v1482_v21  ;;  %1316 = vmatpush3.bf16.msra.mxu0 %v1495_v31 }
  0x2f   : > { %1317 = vmatprep.subr.bf16.mxu0 %v1496_v32 }
  0x31   : > { %1342 = vmatpush3.bf16.msra.mxu1 %v1483_v22 }
  0x32   : > { %1318 = vmatpush3.bf16.msra.mxu0 %v1497_v33  ;;  %1371 = vmatprep.subr.bf16.mxu1 %v1566_v36 }
  0x33   : > { %1319 = vmatprep.subr.bf16.mxu0 %v1498_v34 }
  0x34   : > { %573 = vmatmul.mubr.bf16.vlgmr.msra.gmra.mxu1 %v228_v27 }
  0x35   : > { %1373 = vmatprep.mubr.msk.bf16.mxu1 %vm1576_vm2, %v1566_v36 }
  0x36   : > { %1320 = vmatpush3.bf16.msra.mxu0 %v1499_v35 }
  0x37   : > { %1365 = vmatprep.subr.bf16.mxu0 %v1566_v36 }
  0x39   : > { %398 = vmatmul.mubr.bf16.vlgmr.msra.gmra.mxu0 %v228_v27 }
  0x3a   : > { %1367 = vmatprep.mubr.msk.bf16.mxu0 %vm1576_vm2, %v1566_v36 }
  0xf4   : > { %v1343_v37 = vpop.f32.mrf.mxu1 }
  0xf6   : > { %v1344_v39 = vpop.f32.mrf.mxu1 }
  0xf7   : > { %v1345_v40 = vadd.f32 %v1344_v39, %v1343_v37 }
  0xf8   : > { %v1346_v41 = vpop.f32.mrf.mxu1 }
  0xf9   : > { %v575_v42 = vadd.f32 %v1345_v40, %v1276_v38  ;;  %v1321_v51 = vpop.f32.mrf.mxu0 }
  0xfa   : > { %v1347_v43 = vpop.f32.mrf.mxu1 }
  0xfb   : > { %v581_v44 = vsel %vm580_vm0, %v575_v42, -inf  ;;  %v1322_v54 = vpop.f32.mrf.mxu0 }
  0xfc   : > { %v582_v45 = vrot.slane %v581_v44, 4  ;;  %v1323_v55 = vadd.f32 %v1322_v54, %v1321_v51 }
  0xfd   : > { %v1324_v57 = vpop.f32.mrf.mxu0 }
  0xfe   : > { %v583_v46 = vmax.f32 %v581_v44, %v582_v45  ;;  %v400_v58 = vadd.f32 %v1323_v55, %v1259_v53 }
  0xff   : > { %v1325_v59 = vpop.f32.mrf.mxu0 }
 0x100   : > { %v584_v47 = vrot.slane %v583_v46, 2  ;;  %v600_v60 = vpack.c.bf16 %v400_v58, %v400_v58 }
 0x102   : > { %v585_v48 = vmax.f32 %v583_v46, %v584_v47  ;;  %687 = vrot.lane.b32.xlu1 %v600_v60, %s1567_s12  ;;  %v624_v61 = vsel %vm622_vm1, %v600_v60, 0 }
 0x103   : > { %1366 = vmatpush3.bf16.msra.mxu0 %v624_v61 }
 0x104   : > { %v586_v49 = vrot.slane %v585_v48, 1  ;;  %1377 = vmatprep.subr.bf16.mxu0 %v1566_v36 }
 0x106   : > { %v587_v50 = vmax.f32 %v585_v48, %v586_v49  ;;  %821 = vrot.lane.b32.xlu1 %v600_v60, %s1568_s16 }
 0x108   : > { %v588_v52 = vsub.f32 %v575_v42, %v587_v50 }
 0x10a   : > { %v589_v56 = vmul.f32 1.442695, %v588_v52 }
 0x10c   : > { %1500 = vpow2.f32 %v589_v56 }
 0x119   : > { %v1501_v62 = vpop.eup %1500 }
 0x11a   : > { %v591_v63 = vsel %vm580_vm0, %v1501_v62, 0.0 }
 0x11b   : > { %v592_v0 = vrot.slane %v591_v63, 4 }
 0x11d   : > { %v593_v1 = vadd.f32 %v592_v0, %v591_v63 }
 0x11f   : > { %v594_v2 = vrot.slane %v593_v1, 2 }
 0x121   : > { %v595_v3 = vadd.f32 %v594_v2, %v593_v1 }
 0x123   : > { %v596_v4 = vrot.slane %v595_v3, 1 }
 0x125   : > { %v597_v5 = vadd.f32 %v596_v4, %v595_v3 }
 0x127   : > { %1502 = vrcp.f32 %v597_v5 }
 0x134   : > { %v1503_v6 = vpop.eup %1502 }
 0x135   : > { %v599_v7 = vmul.f32 %v1503_v6, %v1501_v62 }
 0x137   : > { %v601_v8 = vpack.c.bf16 %v599_v7, %v599_v7 }
 0x139   : > { %667 = vrot.lane.b32.xlu0 %v601_v8, %s1569_s17  ;;  %802 = vrot.lane.b32.xlu1 %v601_v8, %s1570_s23 }
 0x13d   : > { %735 = vrot.lane.b32.xlu0 %v601_v8, %s1571_s25  ;;  %869 = vrot.lane.b32.xlu1 %v601_v8, %s1567_s12  ;;  %s1833_s25 = scalar_lea.hbm %s1873_s5, %s1302_s15 }
 0x141   : > { %754 = vrot.lane.b32.xlu0 %v600_v60, %s1572_s26  ;;  %955 = vrot.lane.b32.xlu1 %v600_v60, %s1573_s30 }
 0x145   : > { %936 = vrot.lane.b32.xlu0 %v601_v8, %s1574_s6  ;;  %1003 = vrot.lane.b32.xlu1 %v601_v8, %s1575_s8  ;;  %s1508_s6 = sshll.u32 %s1581_s22, 4  ;;  %s1509_s6 = int_to_ptr.vmem [resolvable:$false] %s1508_s6 }
 0x146   : > { %s1510_s8 = scalar_lea.vmem %s1509_s6, 128 }
 0x149   : > { %888 = vrot.lane.b32.xlu0 %v600_v60, %s1577_s9  ;;  %1089 = vrot.lane.b32.xlu1 %v600_v60, %s1578_s10 }
 0x14d   : > { %1070 = vrot.lane.b32.xlu0 %v601_v8, %s1579_s11 }
 0x151   : > { %1022 = vrot.lane.b32.xlu0 %v600_v60, %s1580_s13 }
 0x16f   : > { %602 = vxpose.xlu0.c.b16.start.end [1/1] (short) (narrow) %v601_v8, 16 }
 0x174   : > { %v688_v9 = vpop.permute.xlu1 %687 }
 0x175   : > { %v693_v10 = vsel %vm622_vm1, %v688_v9, 0 }
 0x176   : > { %1372 = vmatpush3.bf16.msra.mxu1 %v693_v10 }
 0x177   : > { %1383 = vmatprep.subr.bf16.mxu1 %v1566_v36 }
 0x178   : > { %v822_v11 = vpop.permute.xlu1 %821 }
 0x179   : > { %v827_v27 = vsel %vm622_vm1, %v822_v11, 0 }
 0x1ab   : > { %v668_v12 = vpop.permute.xlu0 %667  ;;  %v803_v13 = vpop.permute.xlu1 %802 }
 0x1ac   : > { %670 = vxpose.xlu1.c.b16.start.end [1/1] (short) (narrow) %v668_v12, 16 }
 0x1af   : > { %v736_v14 = vpop.permute.xlu0 %735  ;;  %v870_v15 = vpop.permute.xlu1 %869 }
 0x1b0   : > { %738 = vxpose.xlu0.c.b16.start.end [1/1] (short) (narrow) %v736_v14, 16  ;;  %872 = vxpose.xlu1.c.b16.start.end [1/1] (short) (narrow) %v870_v15, 16 }
 0x1b3   : > { %v755_v16 = vpop.permute.xlu0 %754  ;;  %v956_v17 = vpop.permute.xlu1 %955 }
 0x1b4   : > { %805 = vxpose.xlu0.c.b16.start.end [1/1] (short) (narrow) %v803_v13, 16  ;;  %v760_v24 = vsel %vm622_vm1, %v755_v16, 0  ;;  %v961_v31 = vsel %vm622_vm1, %v956_v17, 0 }
 0x1b7   : > { %v937_v18 = vpop.permute.xlu0 %936  ;;  %v1004_v19 = vpop.permute.xlu1 %1003 }
 0x1b8   : > { %939 = vxpose.xlu0.c.b16.start.end [1/1] (short) (narrow) %v937_v18, 16  ;;  %1006 = vxpose.xlu1.c.b16.start.end [1/1] (short) (narrow) %v1004_v19, 16 }
 0x1bb   : > { %v889_v20 = vpop.permute.xlu0 %888  ;;  %v1090_v25 = vpop.permute.xlu1 %1089 }
 0x1bc   : > { %v894_v29 = vsel %vm622_vm1, %v889_v20, 0  ;;  %v1095_v35 = vsel %vm622_vm1, %v1090_v25, 0 }
 0x1bf   : > { %v1071_v21 = vpop.permute.xlu0 %1070 }
 0x1c0   : > { %1073 = vxpose.xlu0.c.b16.start.end [1/1] (short) (narrow) %v1071_v21, 16 }
 0x1c3   : > { %v1023_v22 = vpop.permute.xlu0 %1022 }
 0x1c4   : > { %v1028_v33 = vsel %vm622_vm1, %v1023_v22, 0 }
 0x1d1   : > { %v610_v23 = vpop.trf.xlu0 }
 0x1d2   : > { %1368 = vmatmul.mubr.msk.bf16.vlgmr.msra.gmra.mxu0 %vm618_vm3, %v610_v23 }
 0x1d3   : > { %1378 = vmatpush3.bf16.msra.mxu0 %v760_v24  ;;  %1379 = vmatprep.mubr.msk.bf16.mxu0 %vm1576_vm2, %v1566_v36 }
 0x1d4   : > { %1389 = vmatprep.subr.bf16.mxu0 %v1566_v36 }
 0x20e   : > { %v678_v26 = vpop.trf.xlu1 }
 0x20f   : > { %1374 = vmatmul.mubr.msk.bf16.vlgmr.msra.gmra.mxu1 %vm618_vm3, %v678_v26 }
 0x210   : > { %1384 = vmatpush3.bf16.msra.mxu1 %v827_v27  ;;  %1385 = vmatprep.mubr.msk.bf16.mxu1 %vm1576_vm2, %v1566_v36 }
 0x211   : > { %1395 = vmatprep.subr.bf16.mxu1 %v1566_v36 }
 0x212   : > { %v746_v28 = vpop.trf.xlu0  ;;  %v880_v32 = vpop.trf.xlu1 }
 0x213   : > { %1380 = vmatmul.mubr.msk.bf16.vlgmr.msra.gmra.mxu0 %vm618_vm3, %v746_v28 }
 0x214   : > { %1390 = vmatpush3.bf16.msra.mxu0 %v894_v29  ;;  %1391 = vmatprep.mubr.msk.bf16.mxu0 %vm1576_vm2, %v1566_v36 }
 0x215   : > { %1401 = vmatprep.subr.bf16.mxu0 %v1566_v36 }
 0x216   : > { %v813_v30 = vpop.trf.xlu0 }
 0x217   : > { %1386 = vmatmul.mubr.msk.bf16.vlgmr.msra.gmra.mxu1 %vm618_vm3, %v813_v30 }
 0x218   : > { %1396 = vmatpush3.bf16.msra.mxu1 %v961_v31  ;;  %1397 = vmatprep.mubr.msk.bf16.mxu1 %vm1576_vm2, %v1566_v36 }
 0x219   : > { %1407 = vmatprep.subr.bf16.mxu1 %v1566_v36 }
 0x21a   : > { %v947_v34 = vpop.trf.xlu0  ;;  %v1014_v37 = vpop.trf.xlu1 }
 0x21b   : > { %1392 = vmatmul.mubr.msk.bf16.vlgmr.msra.gmra.mxu0 %vm618_vm3, %v880_v32 }
 0x21c   : > { %1402 = vmatpush3.bf16.msra.mxu0 %v1028_v33  ;;  %1403 = vmatprep.mubr.msk.bf16.mxu0 %vm1576_vm2, %v1566_v36 }
 0x21f   : > { %1398 = vmatmul.mubr.msk.bf16.vlgmr.msra.gmra.mxu1 %vm618_vm3, %v947_v34 }
 0x220   : > { %1408 = vmatpush3.bf16.msra.mxu1 %v1095_v35  ;;  %1409 = vmatprep.mubr.msk.bf16.mxu1 %vm1576_vm2, %v1566_v36 }
 0x222   : > { %v1081_v38 = vpop.trf.xlu0 }
 0x223   : > { %1404 = vmatmul.mubr.msk.bf16.vlgmr.msra.gmra.mxu0 %vm618_vm3, %v1014_v37 }
 0x227   : > { %1410 = vmatmul.mubr.msk.bf16.vlgmr.msra.gmra.mxu1 %vm618_vm3, %v1081_v38 }
 0x292   : > { %v660_v39 = vpop.f32.mrf.mxu0 }
 0x294   : > { %v1369_v40 = vpop.f32.mrf.mxu0 }
 0x296   : > { %v663_v41 = vpop.f32.mrf.mxu0 }
 0x298   : > { %v1370_v42 = vpop.f32.mrf.mxu0 }
 0x2cf   : > { %v729_v43 = vpop.f32.mrf.mxu1 }
 0x2d0   : > { %1138 = vrot.lane.b32.xlu1 %v729_v43, %s1578_s10 }
 0x2d1   : > { %v1375_v44 = vpop.f32.mrf.mxu1 }
 0x2d3   : > { %v732_v45 = vpop.f32.mrf.mxu1  ;;  %v796_v46 = vpop.f32.mrf.mxu0 }
 0x2d4   : > { %1142 = vrot.lane.b32.xlu0 %v796_v46, %s1580_s13 }
 0x2d5   : > { %v1376_v47 = vpop.f32.mrf.mxu1  ;;  %v1381_v48 = vpop.f32.mrf.mxu0 }
 0x2d7   : > { %v799_v36 = vpop.f32.mrf.mxu0  ;;  %v863_v49 = vpop.f32.mrf.mxu1 }
 0x2d8   : > { %1146 = vrot.lane.b32.xlu1 %v863_v49, %s1573_s30 }
 0x2d9   : > { %v1382_v50 = vpop.f32.mrf.mxu0  ;;  %v1387_v51 = vpop.f32.mrf.mxu1 }
 0x2db   : > { %v866_v52 = vpop.f32.mrf.mxu1  ;;  %v930_v53 = vpop.f32.mrf.mxu0 }
 0x2dc   : > { %1150 = vrot.lane.b32.xlu1 %v930_v53, %s1577_s9 }
 0x2dd   : > { %v1388_v54 = vpop.f32.mrf.mxu1  ;;  %v1393_v55 = vpop.f32.mrf.mxu0 }
 0x2df   : > { %v933_v56 = vpop.f32.mrf.mxu0  ;;  %v997_v57 = vpop.f32.mrf.mxu1 }
 0x2e0   : > { %1154 = vrot.lane.b32.xlu0 %v997_v57, %s1568_s16 }
 0x2e1   : > { %v1394_v58 = vpop.f32.mrf.mxu0  ;;  %v1399_v59 = vpop.f32.mrf.mxu1 }
 0x2e3   : > { %v1000_v60 = vpop.f32.mrf.mxu1  ;;  %v1064_v61 = vpop.f32.mrf.mxu0 }
 0x2e4   : > { %1158 = vrot.lane.b32.xlu1 %v1064_v61, %s1572_s26  ;;  %s1180_s26 = scalar_lea.sflag [#allocation3], %s216_s14 }
 0x2e5   : > { %v1400_v62 = vpop.f32.mrf.mxu1  ;;  %v1405_v63 = vpop.f32.mrf.mxu0 }
 0x2e7   : > { %v1067_v0 = vpop.f32.mrf.mxu0  ;;  %v1131_v1 = vpop.f32.mrf.mxu1 }
 0x2e8   : > { %1162 = vrot.lane.b32.xlu0 %v1131_v1, %s1567_s12  ;;  %s218_s12 = scalar_lea.vmem [#allocation2], %s1256_s7 }
 0x2e9   : > { %v1406_v2 = vpop.f32.mrf.mxu0  ;;  %v1411_v3 = vpop.f32.mrf.mxu1  ;;  %s1193_s16 = sshll.u32 %s218_s12, 4  ;;  %s1194_s16 = int_to_ptr.vmem [resolvable:$true] %s1193_s16 }
 0x2ea   : > { %s1504_s30 = scalar_lea.vmem %s1194_s16, 64  ;;  %p1511_p0 = scmp.lt.s32.totalorder %s1194_s16, %s1509_s6 }
 0x2eb   : > { %v1134_v4 = vpop.f32.mrf.mxu1  ;;  %p1505_p11 = scmp.ne.s32.totalorder %s1194_s16, %s1504_s30  ;;  %p1512_p1 = scmp.lt.s32.totalorder %s1510_s8, %s1504_s30 }
 0x2ed   : > { %v1412_v5 = vpop.f32.mrf.mxu1  ;;  %p1506_p12 = pnand %p1505_p11, %p1650_p5  ;;  %p1513_p2 = por %p1512_p1, %p1511_p0 }
 0x2ef   : > { %p1507_p13 = pneg %p1506_p12 }
 0x2f1   : > { %p1514_p3 = pnand %p1513_p2, %p1507_p13 }
 0x342   : > { %v1139_v6 = vpop.permute.xlu1 %1138 }
 0x343   : > { %v1166_v10 = vsel %vm1165_vm4, %v660_v39, %v1139_v6 }
 0x346   : > { %v1143_v8 = vpop.permute.xlu0 %1142 }
 0x347   : > { %v1167_v11 = vsel %vm580_vm0, %v1166_v10, %v1143_v8 }
 0x34a   : > { %v1147_v7 = vpop.permute.xlu1 %1146 }
 0x34b   : > { %v1169_v13 = vsel %vm1168_vm5, %v1167_v11, %v1147_v7 }
 0x34e   : > { %v1151_v9 = vpop.permute.xlu1 %1150 }
 0x34f   : > { %v1171_v15 = vsel %vm1170_vm6, %v1169_v13, %v1151_v9 }
 0x352   : > { %v1155_v12 = vpop.permute.xlu0 %1154 }
 0x353   : > { %v1173_v16 = vsel %vm1172_vm7, %v1171_v15, %v1155_v12 }
 0x356   : > { %v1159_v14 = vpop.permute.xlu1 %1158 }
 0x357   : > { %v1175_v17 = vsel %vm1174_vm8, %v1173_v16, %v1159_v14 }
 0x35a   : > { %v1163_v18 = vpop.permute.xlu0 %1162 }
 0x35b   : > { %v1177_v19 = vsel %vm1176_vm9, %v1175_v17, %v1163_v18 }
 0x35c   : > { %1178 = vst [vmem:[%s218_s12] sm:$0xf] %v1177_v19 }
 0x35d   : > { %1517 = shalt.err (!%p1514_p3)
}
 0x35e   : > { %s1518_s9 = scalar_lea.hbm %s1833_s25, 64  ;;  %s1522_s13 = scalar_lea.hbm %s1873_s5, 128 }
 0x35f   : > { %p1519_p4 = scmp.ne.s32.totalorder %s1833_s25, %s1518_s9  ;;  %p1523_p9 = scmp.lt.s32.totalorder %s1833_s25, %s1873_s5 }
 0x360   : > { %p1524_p10 = scmp.lt.s32.totalorder %s1522_s13, %s1518_s9 }
 0x361   : > { %p1520_p7 = pnand %p1519_p4, %p1650_p5 }
 0x362   : > { %p1525_p11 = por %p1524_p10, %p1523_p9 }
 0x363   : > { %p1521_p8 = pneg %p1520_p7 }
 0x365   : > { %p1526_p12 = pnand %p1525_p11, %p1521_p8 }
 0x367   : > { %1529 = shalt.err (!%p1526_p12)
}
 0x368   : > { %1413 = dma.vmem_to_hbm [thread:$0]  (%p1650_p5), %s1194_s16, 64, %s1833_s25, %s1180_s26  }
 0x369 PF: > { %p1419_p13 = scmp.ge.s32.totalorder %s1564_s21, 2  ;;  %s1205_s15 = sand.u32 1, %s1552_s18  }
 0x36a   : > { %s1206_s12 = scalar_lea.sflag [#allocation3], %s1205_s15 }
 0x36b   : > { %p1416_p0 = pnand %p1419_p13, %p1654_p6 }
 0x36d   : > { %p1417_p1 = pneg %p1416_p0 }
 0x36f   : > { %1547 = dma.done.wait (%p1417_p1), %s1206_s12, 64  }
 0x370   : > { %1549 = vsyncadd (%p1417_p1), %s1206_s12, 4294967232  ;;  %p15_p2 = scmp.ge.s32.totalorder %s1637_s24, 4   ;;  %s1876_s18 = smov %s1556_s19 }
 0x371   : > { %s1877_s19 = smov %s1560_s20  ;;  %s1878_s20 = smov %s1648_s27 }
 0x372   : > { %s1879_s21 = smov %s1637_s24  ;;  %17 = sbr.rel (!%p15_p2) target bundleno = 3 (0x3), region = 75 }
 0x377   :  { %1211 = vsyncpa [#allocation3], 1 }
 0x378   :  { %1213 = vsyncpa [#allocation3 + $0x1], 1 }

</bundles_post_ra>
